<compile_context>
chip_gen: v6e
topology: v6e:2x2x1
jax: 0.10.0
libtpu: 0.0.40
codegen_flags: <defaults>
</compile_context>

<pallas_src>
import functools
import math

import jax
import jax.numpy as jnp
from jax.experimental import pallas as pl
from jax.experimental.pallas import tpu as pltpu


def _self_attention_kernel(qkv_ref, o_ref, *, inv_scale, batch):
    # qkv_ref: (3, B, S, D) VMEM block; o_ref: (Sq, B*D) lane-dense VMEM block.
    qkv = qkv_ref[...]  # one load of the whole (tiny) fused operand

    outs = []
    for b in range(batch):  # static unroll over the (small) batch
        q = qkv[0, b]  # (Sq, D)
        k = qkv[1, b]  # (Sk, D)
        v = qkv[2, b]  # (Sk, D)

        # scores (Sq, Sk): contract over D directly on the MXU (no k.T
        # materialization), f32 accumulation; scale folded as a constant
        # multiply on the small score tile.
        u = jnp.einsum("qd,kd->qk", q, k,
                       preferred_element_type=jnp.float32) * inv_scale

        # softmax over dim=1 of the original (B, Sq, Sk) scores == the query
        # axis == axis 0 of this (Sq, Sk) tile (sublane/XLU reduction; Sk
        # stays on the lane axis so the next matmul needs no transpose).
        m = jnp.max(u, axis=0, keepdims=True)
        e = jnp.exp(u - m)
        denom = jnp.sum(e, axis=0, keepdims=True)
        attn = e * pl.reciprocal(denom, approx=False)

        # out_b (Sq, D): contract over Sk on the MXU.
        outs.append(jnp.einsum("qk,kd->qd", attn, v,
                               preferred_element_type=jnp.float32))

    # Lane-dense slab (Sq, B*D) = (8, 128): one unmasked full-width store.
    o_ref[...] = jnp.concatenate(outs, axis=-1).astype(o_ref.dtype)


def self_attention(q, k, v, scale):
    """q: (B, Sq, D), k: (B, Sk, D), v: (B, Sk, D) -> (B, Sq, D).

    Shipped sizes have Sq == Sk == S and D == 64 (as implied by the module).
    """
    B, Sq, D = q.shape
    _, Sk, _ = k.shape
    assert k.shape == v.shape and q.shape[0] == k.shape[0] and q.shape[2] == k.shape[2]
    assert Sq == Sk, "fused q/k/v stacking assumes equal sequence lengths"

    # Fuse the three tiny operands into one input -> a single DMA per call.
    qkv = jnp.stack([q, k, v])  # (3, B, S, D)

    kernel = functools.partial(
        _self_attention_kernel, inv_scale=1.0 / scale, batch=B)

    # Advisory cost estimate (lets XLA schedule/overlap the tiny call).
    flops = 4 * B * Sq * Sk * D                       # two matmuls, 2 flops/MAC
    transcendentals = B * Sq * Sk + B * Sk            # exp + reciprocal
    bytes_accessed = 4 * (3 * B * Sk * D + B * Sq * D)  # fused input + output

    out2d = pl.pallas_call(
        kernel,
        out_shape=jax.ShapeDtypeStruct((Sq, B * D), q.dtype),
        grid_spec=pltpu.PrefetchScalarGridSpec(
            num_scalar_prefetch=0,
            grid=(1,),  # single step: no batch split across TensorCores
            in_specs=[
                pl.BlockSpec((3, B, Sq, D), lambda i: (0, 0, 0, 0)),
            ],
            out_specs=pl.BlockSpec((Sq, B * D), lambda i: (0, 0)),
        ),
        compiler_params=pltpu.CompilerParams(
            dimension_semantics=("arbitrary",),
        ),
        cost_estimate=pl.CostEstimate(
            flops=flops,
            transcendentals=transcendentals,
            bytes_accessed=bytes_accessed,
        ),
    )(qkv)

    # Undo the lane packing: (Sq, B*D) -> (Sq, B, D) -> (B, Sq, D).
    return jnp.transpose(out2d.reshape(Sq, B, D), (1, 0, 2))


if __name__ == "__main__":
    # Module constant: scale = sqrt(64) whenever a (non-None) scale is passed.
    scale = math.sqrt(64.0)

    key = jax.random.PRNGKey(0)
    kq, kk, kv = jax.random.split(key, 3)

    B, S, D = 2, 8, 64
    q = jax.random.normal(kq, (B, S, D), jnp.float32)
    k = jax.random.normal(kk, (B, S, D), jnp.float32)
    v = jax.random.normal(kv, (B, S, D), jnp.float32)

    out = self_attention(q, k, v, scale)
    out = jax.block_until_ready(out)

    # Pure-JAX reference (same semantics as the PyTorch forward).
    u_ref = jnp.einsum("bqd,bkd->bqk", q, k) / scale
    attn_ref = jax.nn.softmax(u_ref, axis=1)  # dim=1 softmax, as in the module
    out_ref = jnp.einsum("bqk,bkd->bqd", attn_ref, v)

    assert out.shape == (B, S, D)
    assert jnp.allclose(out, out_ref, atol=1e-3, rtol=1e-3)

    print("KERNEL_OK")
</pallas_src>

<mosaic_0001>
module attributes {stable_mosaic.version = 11 : i64} {
  func.func @_self_attention_kernel(%arg0: i32, %arg1: memref<3x2x8x64xf32, #tpu.memory_space<vmem>>, %arg2: memref<8x128xf32, #tpu.memory_space<vmem>>) attributes {dimension_semantics = [#tpu.dimension_semantics<arbitrary>], iteration_bounds = array<i64: 1>, scalar_prefetch = 0 : i64, scratch_operands = 0 : i64, tpu.core_type = #tpu.core_type<tc>, window_params = [{pipeline_mode = #tpu.pipeline_mode<synchronous>, transform_indices = @transform_0, window_bounds = array<i64: 3, 2, 8, 64>}, {pipeline_mode = #tpu.pipeline_mode<synchronous>, transform_indices = @transform_1, window_bounds = array<i64: 8, 128>}]} {
    %c0 = arith.constant 0 : index
    %c0_0 = arith.constant 0 : index
    %c0_1 = arith.constant 0 : index
    %c0_2 = arith.constant 0 : index
    %0 = vector.load %arg1[%c0, %c0_0, %c0_1, %c0_2] : memref<3x2x8x64xf32, #tpu.memory_space<vmem>>, vector<3x2x8x64xf32>
    %1 = vector.extract_strided_slice %0 {offsets = [0, 0, 0, 0], sizes = [1, 1, 8, 64], strides = [1, 1, 1, 1]} : vector<3x2x8x64xf32> to vector<1x1x8x64xf32>
    %2 = vector.shape_cast %1 : vector<1x1x8x64xf32> to vector<8x64xf32>
    %3 = vector.extract_strided_slice %0 {offsets = [1, 0, 0, 0], sizes = [1, 1, 8, 64], strides = [1, 1, 1, 1]} : vector<3x2x8x64xf32> to vector<1x1x8x64xf32>
    %4 = vector.shape_cast %3 : vector<1x1x8x64xf32> to vector<8x64xf32>
    %5 = vector.extract_strided_slice %0 {offsets = [2, 0, 0, 0], sizes = [1, 1, 8, 64], strides = [1, 1, 1, 1]} : vector<3x2x8x64xf32> to vector<1x1x8x64xf32>
    %6 = vector.shape_cast %5 : vector<1x1x8x64xf32> to vector<8x64xf32>
    "tpu.trace_start"() <{level = 10 : i32, message = "qd,kd->qk"}> : () -> ()
    %cst = arith.constant dense<0.000000e+00> : vector<8x8xf32>
    %7 = tpu.matmul %2, %4, %cst {dimension_numbers = #tpu.dot_dimension_numbers<[1], [1], [0], [0], [0, 0, 1, 0], [], []>} : vector<8x64xf32>, vector<8x64xf32>, vector<8x8xf32> -> vector<8x8xf32>
    "tpu.trace_stop"() : () -> ()
    %cst_3 = arith.constant 1.250000e-01 : f32
    %8 = vector.broadcast %cst_3 : f32 to vector<8x8xf32>
    %9 = arith.mulf %7, %8 : vector<8x8xf32>
    %cst_4 = arith.constant dense<0xFF800000> : vector<8xf32>
    %10 = vector.multi_reduction <maximumf>, %9, %cst_4 [0] : vector<8x8xf32> to vector<8xf32>
    %11 = vector.shape_cast %10 : vector<8xf32> to vector<1x8xf32>
    %12 = vector.broadcast %11 : vector<1x8xf32> to vector<8x8xf32>
    %13 = arith.subf %9, %12 : vector<8x8xf32>
    %14 = math.exp %13 : vector<8x8xf32>
    %cst_5 = arith.constant dense<0.000000e+00> : vector<8xf32>
    %15 = vector.multi_reduction <add>, %14, %cst_5 [0] : vector<8x8xf32> to vector<8xf32>
    %16 = vector.shape_cast %15 : vector<8xf32> to vector<1x8xf32>
    %17 = tpu.reciprocal %16 : vector<1x8xf32> -> vector<1x8xf32>
    %18 = vector.broadcast %17 : vector<1x8xf32> to vector<8x8xf32>
    %19 = arith.mulf %14, %18 : vector<8x8xf32>
    "tpu.trace_start"() <{level = 10 : i32, message = "qk,kd->qd"}> : () -> ()
    %cst_6 = arith.constant dense<0.000000e+00> : vector<8x64xf32>
    %20 = tpu.matmul %19, %6, %cst_6 {dimension_numbers = #tpu.dot_dimension_numbers<[1], [0], [0], [1], [0, 0, 1, 1], [], []>} : vector<8x8xf32>, vector<8x64xf32>, vector<8x64xf32> -> vector<8x64xf32>
    "tpu.trace_stop"() : () -> ()
    %21 = vector.extract_strided_slice %0 {offsets = [0, 1, 0, 0], sizes = [1, 1, 8, 64], strides = [1, 1, 1, 1]} : vector<3x2x8x64xf32> to vector<1x1x8x64xf32>
    %22 = vector.shape_cast %21 : vector<1x1x8x64xf32> to vector<8x64xf32>
    %23 = vector.extract_strided_slice %0 {offsets = [1, 1, 0, 0], sizes = [1, 1, 8, 64], strides = [1, 1, 1, 1]} : vector<3x2x8x64xf32> to vector<1x1x8x64xf32>
    %24 = vector.shape_cast %23 : vector<1x1x8x64xf32> to vector<8x64xf32>
    %25 = vector.extract_strided_slice %0 {offsets = [2, 1, 0, 0], sizes = [1, 1, 8, 64], strides = [1, 1, 1, 1]} : vector<3x2x8x64xf32> to vector<1x1x8x64xf32>
    %26 = vector.shape_cast %25 : vector<1x1x8x64xf32> to vector<8x64xf32>
    "tpu.trace_start"() <{level = 10 : i32, message = "qd,kd->qk"}> : () -> ()
    %cst_7 = arith.constant dense<0.000000e+00> : vector<8x8xf32>
    %27 = tpu.matmul %22, %24, %cst_7 {dimension_numbers = #tpu.dot_dimension_numbers<[1], [1], [0], [0], [0, 0, 1, 0], [], []>} : vector<8x64xf32>, vector<8x64xf32>, vector<8x8xf32> -> vector<8x8xf32>
    "tpu.trace_stop"() : () -> ()
    %cst_8 = arith.constant 1.250000e-01 : f32
    %28 = vector.broadcast %cst_8 : f32 to vector<8x8xf32>
    %29 = arith.mulf %27, %28 : vector<8x8xf32>
    %cst_9 = arith.constant dense<0xFF800000> : vector<8xf32>
    %30 = vector.multi_reduction <maximumf>, %29, %cst_9 [0] : vector<8x8xf32> to vector<8xf32>
    %31 = vector.shape_cast %30 : vector<8xf32> to vector<1x8xf32>
    %32 = vector.broadcast %31 : vector<1x8xf32> to vector<8x8xf32>
    %33 = arith.subf %29, %32 : vector<8x8xf32>
    %34 = math.exp %33 : vector<8x8xf32>
    %cst_10 = arith.constant dense<0.000000e+00> : vector<8xf32>
    %35 = vector.multi_reduction <add>, %34, %cst_10 [0] : vector<8x8xf32> to vector<8xf32>
    %36 = vector.shape_cast %35 : vector<8xf32> to vector<1x8xf32>
    %37 = tpu.reciprocal %36 : vector<1x8xf32> -> vector<1x8xf32>
    %38 = vector.broadcast %37 : vector<1x8xf32> to vector<8x8xf32>
    %39 = arith.mulf %34, %38 : vector<8x8xf32>
    "tpu.trace_start"() <{level = 10 : i32, message = "qk,kd->qd"}> : () -> ()
    %cst_11 = arith.constant dense<0.000000e+00> : vector<8x64xf32>
    %40 = tpu.matmul %39, %26, %cst_11 {dimension_numbers = #tpu.dot_dimension_numbers<[1], [0], [0], [1], [0, 0, 1, 1], [], []>} : vector<8x8xf32>, vector<8x64xf32>, vector<8x64xf32> -> vector<8x64xf32>
    "tpu.trace_stop"() : () -> ()
    %41 = tpu.concatenate %20, %40 in 1 : vector<8x64xf32>, vector<8x64xf32> -> vector<8x128xf32>
    %c0_12 = arith.constant 0 : index
    %c0_13 = arith.constant 0 : index
    %42 = vector.load %arg2[%c0_12, %c0_13] : memref<8x128xf32, #tpu.memory_space<vmem>>, vector<8x128xf32>
    tpu.vector_store %arg2[%c0_12, %c0_13], %41 {strides = array<i32>} : memref<8x128xf32, #tpu.memory_space<vmem>>, vector<8x128xf32>,
    return
  }
  func.func @transform_0(%arg0: i32) -> (i32, i32, i32, i32) {
    %c0_i32 = arith.constant 0 : i32
    %c0_i32_0 = arith.constant 0 : i32
    %c0_i32_1 = arith.constant 0 : i32
    %c0_i32_2 = arith.constant 0 : i32
    %c0_i32_3 = arith.constant 0 : i32
    return %c0_i32, %c0_i32_0, %c0_i32_1, %c0_i32_2 : i32, i32, i32, i32
  }
  func.func @transform_1(%arg0: i32) -> (i32, i32) {
    %c0_i32 = arith.constant 0 : i32
    %c0_i32_0 = arith.constant 0 : i32
    %c0_i32_1 = arith.constant 0 : i32
    return %c0_i32, %c0_i32_0 : i32, i32
  }
}

</mosaic_0001>

<bundles_post_ra>
// kernel: tpu_custom_call.1
= control target key start
LH: loop header
LB: loop body
LE: loop exit
PB: predicated region body
PF: predicated region fallthrough
CT: control target
= control target key end

     0   :  { %6 = vsyncpa [#allocation3], 0  ;;  %s521_s0 = inlined_call_operand.hbm [shape: f32[3,2,8,64], index: 0, kind: input, shape index: {}]   ;;  %s522_s1 = inlined_call_operand.hbm [shape: f32[8,128], index: 1, kind: output, shape index: {}]  }
   0x1   :  { %7 = vsyncpa [#allocation4], 0  ;;  %s483_s6 = smov [#allocation2]  }
   0x2   :  { %s13_s7 = sshll.u32 %s483_s6, 4  ;;  %s14_s7 = int_to_ptr.vmem [resolvable:$true] %s13_s7 }
   0x3   :  { %s447_s8 = scalar_lea.vmem %s14_s7, 768  ;;  %p452_p1 = scmp.lt.s32.totalorder %s14_s7, %s14_s7 }
   0x4   :  { %p448_p0 = scmp.ne.s32.totalorder %s14_s7, %s447_s8  ;;  %p453_p2 = scmp.lt.s32.totalorder %s447_s8, %s447_s8 }
   0x6   :  { %p454_p3 = por %p453_p2, %p452_p1 }
   0x8   :  { %p455_p4 = pnand %p454_p3, %p448_p0 }
   0xa   :  { %458 = shalt.err (!%p455_p4)
}
   0xb   :  { %s484_s9 = smov 128   ;;  %s485_s10 = smov 8  }
   0xc   :  { %19 = dma.hbm_to_vmem [thread:$0]  %s521_s0, 768, %s14_s7, [#allocation3], %s484_s9, %s484_s9, %s485_s10  }
   0xd   :  { %479 = dma.done.wait [#allocation3], 768  }
   0xe   :  { %480 = vsyncadd [#allocation3], 4294966528  ;;  %v486_v0 = vmov 0.0   ;;  %vm487_vm0 = vmmov 0   ;;  %vm29_vm1 = vcmask 523264   ;;  %v25_v1 = vld [vmem:[#allocation2 + $0x10] sm:$0xff] }
   0xf   :  { %404 = vmatprep.subr.mxu0 %v486_v0  ;;  %406 = vmatprep.mubr.msk.f32.mxu0 %vm487_vm0, %v486_v0  ;;  %v23_v2 = vld [vmem:[#allocation2] sm:$0xff]  ;;  %vm107_vm2 = vcmask 64512   ;;  %v26_v26 = vld [vmem:[#allocation2 + $0x18] sm:$0xff]  ;;  %v24_v27 = vld [vmem:[#allocation2 + $0x8] sm:$0xff]  ;;  %s488_s0 = smov 64   ;;  %s489_s13 = smov [#allocation5]  }
  0x10   :  { %409 = vmatprep.subr.mxu1 %v486_v0  ;;  %411 = vmatprep.mubr.msk.f32.mxu1 %vm487_vm0, %v486_v0  ;;  %v27_v3 = vld [vmem:[#allocation2 + $0x20] sm:$0xff]  ;;  %v28_v28 = vld [vmem:[#allocation2 + $0x28] sm:$0xff]  ;;  %s381_s14 = sshll.u32 %s489_s13, 4  ;;  %s382_s14 = int_to_ptr.vmem [resolvable:$true] %s381_s14 }
  0x11   :  { %405 = vmatpush3.xpose.msk.msra.mxu0 %vm29_vm1, %v25_v1  ;;  %410 = vmatpush3.msra.mxu1 %v27_v3  ;;  %s459_s15 = scalar_lea.vmem %s382_s14, 128  ;;  %p464_p6 = scmp.lt.s32.totalorder %s382_s14, %s382_s14 }
  0x12   :  { %419 = vmatprep.subr.mxu0 %v486_v0  ;;  %414 = vmatprep.subr.mxu1 %v486_v0  ;;  %p460_p5 = scmp.ne.s32.totalorder %s382_s14, %s459_s15  ;;  %p465_p7 = scmp.lt.s32.totalorder %s459_s15, %s459_s15 }
  0x14   :  { %407 = vmatmul.mubr.msk.f32.vlgmr.msra.gmra.mxu0 %vm29_vm1, %v23_v2  ;;  %p466_p8 = por %p465_p7, %p464_p6 }
  0x15   :  { %421 = vmatprep.mubr.msk.f32.mxu0 %vm487_vm0, %v486_v0  ;;  %420 = vmatpush3.msra.mxu0 %v28_v28 }
  0x16   :  { %p467_p9 = pnand %p466_p8, %p460_p5 }
  0xd4   :  { %v102_v4 = vpop.f32.mrf.mxu0 }
  0xd5   :  { %v106_v5 = vmul.f32 0.125, %v102_v4 }
  0xd6   :  { %v408_v6 = vpop.f32.mrf.mxu0 }
  0xd7   :  { %v108_v7 = vsel %vm107_vm2, %v106_v5, -inf }
  0xd8   :  { %v109_v8 = vrot.slane %v108_v7, 4 }
  0xda   :  { %v110_v9 = vmax.f32 %v108_v7, %v109_v8 }
  0xdc   :  { %v111_v10 = vrot.slane %v110_v9, 2 }
  0xde   :  { %v112_v11 = vmax.f32 %v110_v9, %v111_v10 }
  0xe0   :  { %v113_v12 = vrot.slane %v112_v11, 1 }
  0xe2   :  { %v114_v13 = vmax.f32 %v112_v11, %v113_v12 }
  0xe4   :  { %v115_v14 = vsub.f32 %v106_v5, %v114_v13 }
  0xe6   :  { %v116_v15 = vmul.f32 1.442695, %v115_v14 }
  0xe8   :  { %431 = vpow2.f32 %v116_v15 }
  0xf5   :  { %v432_v16 = vpop.eup %431 }
  0xf6   :  { %v118_v17 = vsel %vm107_vm2, %v432_v16, 0.0 }
  0xf7   :  { %v119_v18 = vrot.slane %v118_v17, 4 }
  0xf9   :  { %v120_v19 = vadd.f32 %v119_v18, %v118_v17 }
  0xfb   :  { %v121_v20 = vrot.slane %v120_v19, 2 }
  0xfd   :  { %v122_v21 = vadd.f32 %v121_v20, %v120_v19 }
  0xff   :  { %v123_v22 = vrot.slane %v122_v21, 1 }
 0x101   :  { %v124_v23 = vadd.f32 %v123_v22, %v122_v21 }
 0x103   :  { %433 = vrcp.f32 %v124_v23 }
 0x110   :  { %v434_v24 = vpop.eup %433 }
 0x111   :  { %v126_v25 = vmul.f32 %v434_v24, %v432_v16 }
 0x113   :  { %412 = vmatmul.mubr.msk.f32.vlgmr.msra.gmra.mxu1 %vm107_vm2, %v126_v25 }
 0x114   :  { %415 = vmatpush3.xpose.msk.msra.mxu1 %vm29_vm1, %v26_v26  ;;  %416 = vmatprep.mubr.msk.f32.mxu1 %vm487_vm0, %v486_v0 }
 0x117   :  { %417 = vmatmul.mubr.msk.f32.vlgmr.msra.gmra.mxu1 %vm29_vm1, %v24_v27 }
 0x1d3   :  { %v196_v29 = vpop.f32.mrf.mxu1 }
 0x1d5   :  { %v413_v30 = vpop.f32.mrf.mxu1 }
 0x1d7   :  { %v272_v31 = vpop.f32.mrf.mxu1 }
 0x1d8   :  { %v276_v32 = vmul.f32 0.125, %v272_v31 }
 0x1d9   :  { %v418_v33 = vpop.f32.mrf.mxu1 }
 0x1da   :  { %v277_v34 = vsel %vm107_vm2, %v276_v32, -inf }
 0x1db   :  { %v278_v35 = vrot.slane %v277_v34, 4 }
 0x1dd   :  { %v279_v36 = vmax.f32 %v277_v34, %v278_v35 }
 0x1df   :  { %v280_v37 = vrot.slane %v279_v36, 2 }
 0x1e1   :  { %v281_v38 = vmax.f32 %v279_v36, %v280_v37 }
 0x1e3   :  { %v282_v39 = vrot.slane %v281_v38, 1 }
 0x1e5   :  { %v283_v40 = vmax.f32 %v281_v38, %v282_v39 }
 0x1e7   :  { %v284_v41 = vsub.f32 %v276_v32, %v283_v40 }
 0x1e9   :  { %v285_v42 = vmul.f32 1.442695, %v284_v41 }
 0x1eb   :  { %435 = vpow2.f32 %v285_v42 }
 0x1f8   :  { %v436_v43 = vpop.eup %435 }
 0x1f9   :  { %v287_v44 = vsel %vm107_vm2, %v436_v43, 0.0 }
 0x1fa   :  { %v288_v45 = vrot.slane %v287_v44, 4 }
 0x1fc   :  { %v289_v46 = vadd.f32 %v288_v45, %v287_v44 }
 0x1fe   :  { %v290_v47 = vrot.slane %v289_v46, 2 }
 0x200   :  { %v291_v48 = vadd.f32 %v290_v47, %v289_v46 }
 0x202   :  { %v292_v49 = vrot.slane %v291_v48, 1 }
 0x204   :  { %v293_v50 = vadd.f32 %v292_v49, %v291_v48 }
 0x206   :  { %437 = vrcp.f32 %v293_v50 }
 0x213   :  { %v438_v51 = vpop.eup %437 }
 0x214   :  { %v295_v52 = vmul.f32 %v438_v51, %v436_v43 }
 0x216   :  { %422 = vmatmul.mubr.msk.f32.vlgmr.msra.gmra.mxu0 %vm107_vm2, %v295_v52 }
 0x2d6   :  { %v365_v53 = vpop.f32.mrf.mxu0 }
 0x2d7   :  { %370 = vrot.lane.b32.xlu0 %v365_v53, %s488_s0 }
 0x2d8   :  { %v423_v54 = vpop.f32.mrf.mxu0 }
 0x349   :  { %v371_v55 = vpop.permute.xlu0 %370 }
 0x34a   :  { %v373_v56 = vsel %vm29_vm1, %v196_v29, %v371_v55 }
 0x34b   :  { %374 = vst [vmem:[#allocation5] sm:$0xff] %v373_v56 }
 0x34c   :  { %470 = shalt.err (!%p467_p9)
}
 0x34d   :  { %384 = dma.vmem_to_hbm [thread:$0]  %s382_s14, 128, %s522_s1, [#allocation4]  }
 0x34e   :  { %481 = dma.done.wait [#allocation4], 128  }
 0x34f   :  { %482 = vsyncadd [#allocation4], 4294967168 }
 0x350   :  { %388 = vsyncpa [#allocation3], 1 }
 0x351   :  { %389 = vsyncpa [#allocation4], 1 }

</bundles_post_ra>
